<compile_context>
chip_gen: v7x
topology: tpu7x:2x2x1
jax: 0.10.0
libtpu: 0.0.40
codegen_flags: <defaults>
</compile_context>

<pallas_src>
import jax
import jax.numpy as jnp
from jax.experimental import pallas as pl
from jax.experimental.pallas import tpu as pltpu

EPS = 1e-5


# ----------------------------------------------------------------------------
# Kernel 1: SiLU(temb) @ W + b  ->  shift, scale, gate   (runs once, tiny)
# ----------------------------------------------------------------------------
def _proj_kernel(temb_ref, w_ref, b_ref, shift_ref, scale_ref, gate_ref):
    # temb_ref: (B, C)   w_ref: (C, 3D)   b_ref: (1, 3D)
    # shift/scale: (B, D) f32 outputs,  gate: (B, D) in output dtype
    D = shift_ref.shape[-1]

    temb = temb_ref[...].astype(jnp.float32)
    silu = temb * jax.nn.sigmoid(temb)
    # Feed the MXU in the weight's native dtype (bf16 x bf16 -> f32 when bf16),
    # accumulate in f32.
    lhs = silu.astype(w_ref.dtype)
    proj = jnp.dot(lhs, w_ref[...], preferred_element_type=jnp.float32)
    proj = proj + b_ref[...].astype(jnp.float32)            # (B, 3D)

    shift_ref[...] = proj[:, 0 * D:1 * D].astype(shift_ref.dtype)
    scale_ref[...] = proj[:, 1 * D:2 * D].astype(scale_ref.dtype)
    gate_ref[...] = proj[:, 2 * D:3 * D].astype(gate_ref.dtype)


# ----------------------------------------------------------------------------
# Kernel 2: LayerNorm over D + AdaLN-Zero modulation, tiled over (B, S)
# ----------------------------------------------------------------------------
def _ln_mod_kernel(hs_ref, shift_ref, scale_ref, gamma_ref, beta_ref, out_ref):
    # hs_ref/out_ref: (1, TS, D)   shift/scale: (1, D)   gamma/beta: (1, D)
    hs = hs_ref[...]

    # ---- statistics in f32 (biased variance, eps inside rsqrt) ----
    x = hs.astype(jnp.float32)
    mean = jnp.mean(x, axis=-1, keepdims=True)
    centered = x - mean
    var = jnp.mean(centered * centered, axis=-1, keepdims=True)
    inv = jax.lax.rsqrt(var + EPS)

    # ---- elementwise math: keep bf16 inputs in bf16 (v6e/v7x VALU path),
    #      everything else in f32 (v5e VPU has no bf16 path anyway) ----
    cdt = jnp.bfloat16 if hs.dtype == jnp.bfloat16 else jnp.float32
    normed = (centered * inv).astype(cdt)

    gamma = gamma_ref[...].astype(cdt)                      # (1, D)
    beta = beta_ref[...].astype(cdt)                        # (1, D)
    scale1 = (1.0 + scale_ref[...].astype(jnp.float32)).astype(cdt)[:, None, :]
    shift = shift_ref[...].astype(cdt)[:, None, :]

    out = (normed * gamma + beta) * scale1 + shift
    out_ref[...] = out.astype(out_ref.dtype)


# ----------------------------------------------------------------------------
# Tile-size heuristic: conservative so double-buffered in+out tiles plus f32
# temporaries fit the smallest scoped-VMEM defaults (16 MiB v5e, 32 MiB
# v6e/v7x; 64 MiB physical on v7x).
# ----------------------------------------------------------------------------
def _choose_seq_tile(S, D, dtype):
    itemsize = jnp.dtype(dtype).itemsize
    budget_bytes = 16 * 1024 * 1024
    # ~4x tile footprint (in + out, double-buffered) + ~2 f32 temporaries.
    bytes_per_row = D * (4 * itemsize + 2 * 4)
    ts = max(8, budget_bytes // max(1, bytes_per_row))
    ts = min(ts, 1024, S)
    if ts < S:
        ts = max(8, (ts // 8) * 8)   # keep the sublane (8) divisibility rule
    return ts


def layer_norm_zero(hidden_states, temb, w, b, gamma, beta):
    """Fused LayerNormZero forward.

    hidden_states: (B, S, D) or (B, D)
    temb:          (B, C)
    w:             (C, 3D)   linear weight (transposed vs. torch's (3D, C))
    b:             (3D,)     linear bias
    gamma, beta:   (D,)      LayerNorm affine params
    Returns (out, gate) matching the PyTorch module's shapes.
    """
    squeeze = hidden_states.ndim == 2
    if squeeze:
        hidden_states = hidden_states[:, None, :]           # (B, 1, D)

    B, S, D = hidden_states.shape
    out_dtype = hidden_states.dtype

    # ---- projection (once): shift/scale in f32, gate in output dtype ----
    vmem = pl.BlockSpec(memory_space=pltpu.MemorySpace.VMEM)
    shift, scale, gate = pl.pallas_call(
        _proj_kernel,
        out_shape=(
            jax.ShapeDtypeStruct((B, D), jnp.float32),
            jax.ShapeDtypeStruct((B, D), jnp.float32),
            jax.ShapeDtypeStruct((B, D), out_dtype),
        ),
        in_specs=[vmem, vmem, vmem],
        out_specs=(vmem, vmem, vmem),
    )(temb, w, b.reshape(1, -1))

    # ---- tiled LayerNorm + modulation over (B, S) ----
    ts = _choose_seq_tile(S, D, out_dtype)
    grid = (B, pl.cdiv(S, ts))

    out = pl.pallas_call(
        _ln_mod_kernel,
        out_shape=jax.ShapeDtypeStruct((B, S, D), out_dtype),
        grid=grid,
        in_specs=[
            pl.BlockSpec((1, ts, D), lambda bi, si: (bi, si, 0)),   # hs tile
            pl.BlockSpec((1, D), lambda bi, si: (bi, 0)),           # shift (resident per b)
            pl.BlockSpec((1, D), lambda bi, si: (bi, 0)),           # scale (resident per b)
            pl.BlockSpec((1, D), lambda bi, si: (0, 0)),            # gamma (resident)
            pl.BlockSpec((1, D), lambda bi, si: (0, 0)),            # beta  (resident)
        ],
        out_specs=pl.BlockSpec((1, ts, D), lambda bi, si: (bi, si, 0)),
        compiler_params=pltpu.CompilerParams(
            dimension_semantics=("parallel", "parallel")),
    )(hidden_states, shift, scale, gamma.reshape(1, -1), beta.reshape(1, -1))

    if squeeze:
        out = out[:, 0, :]
        # 2-D input path of the PyTorch module: gate stays (B, D).
        return out, gate
    return out, gate[:, None, :]


def _reference(hidden_states, temb, w, b, gamma, beta):
    """Pure-JAX reference mirroring the PyTorch forward."""
    silu = temb * jax.nn.sigmoid(temb)
    proj = silu @ w + b
    D = gamma.shape[0]
    shift, scale, gate = proj[:, :D], proj[:, D:2 * D], proj[:, 2 * D:]
    mean = jnp.mean(hidden_states, axis=-1, keepdims=True)
    var = jnp.mean((hidden_states - mean) ** 2, axis=-1, keepdims=True)
    normed = (hidden_states - mean) / jnp.sqrt(var + EPS) * gamma + beta
    if hidden_states.ndim == 3:
        out = normed * (1 + scale)[:, None, :] + shift[:, None, :]
        gate = gate[:, None, :]
    else:
        out = normed * (1 + scale) + shift
    return out, gate


if __name__ == "__main__":
    # Small deterministic example shapes.
    B, S = 2, 8
    cond_dim, embed_dim = 32, 32

    key = jax.random.PRNGKey(0)
    k_hs, k_temb, k_w, k_b = jax.random.split(key, 4)

    hidden_states = jax.random.normal(k_hs, (B, S, embed_dim), jnp.float32)
    temb = jax.random.normal(k_temb, (B, cond_dim), jnp.float32)

    # Deterministic parameter init (synthetic; shapes per nn.Linear / nn.LayerNorm).
    w = jax.random.normal(k_w, (cond_dim, 3 * embed_dim), jnp.float32) * 0.05
    b = jax.random.normal(k_b, (3 * embed_dim,), jnp.float32) * 0.05
    gamma = jnp.ones((embed_dim,), jnp.float32)   # LayerNorm weight default
    beta = jnp.zeros((embed_dim,), jnp.float32)   # LayerNorm bias default

    out, gate = layer_norm_zero(hidden_states, temb, w, b, gamma, beta)
    out, gate = jax.block_until_ready((out, gate))

    ref_out, ref_gate = _reference(hidden_states, temb, w, b, gamma, beta)
    assert out.shape == (B, S, embed_dim) and gate.shape == (B, 1, embed_dim)
    assert jnp.allclose(out, ref_out, atol=1e-5, rtol=1e-5)
    assert jnp.allclose(gate, ref_gate, atol=1e-5, rtol=1e-5)

    # Also exercise the 2-D hidden_states branch.
    out2d, gate2d = layer_norm_zero(hidden_states[:, 0, :], temb, w, b, gamma, beta)
    out2d, gate2d = jax.block_until_ready((out2d, gate2d))
    ref_out2d, ref_gate2d = _reference(hidden_states[:, 0, :], temb, w, b, gamma, beta)
    assert jnp.allclose(out2d, ref_out2d, atol=1e-5, rtol=1e-5)
    assert jnp.allclose(gate2d, ref_gate2d, atol=1e-5, rtol=1e-5)

    print("KERNEL_OK")
</pallas_src>

<mosaic_0001>
module attributes {stable_mosaic.version = 11 : i64} {
  func.func @_proj_kernel(%arg0: memref<2x32xf32, #tpu.memory_space<vmem>>, %arg1: memref<32x96xf32, #tpu.memory_space<vmem>>, %arg2: memref<1x96xf32, #tpu.memory_space<vmem>>, %arg3: memref<2x32xf32, #tpu.memory_space<vmem>>, %arg4: memref<2x32xf32, #tpu.memory_space<vmem>>, %arg5: memref<2x32xf32, #tpu.memory_space<vmem>>) attributes {dimension_semantics = [], scalar_prefetch = 0 : i64, scratch_operands = 0 : i64, tpu.core_type = #tpu.core_type<tc>} {
    %c0 = arith.constant 0 : index
    %c0_0 = arith.constant 0 : index
    %0 = vector.load %arg0[%c0, %c0_0] : memref<2x32xf32, #tpu.memory_space<vmem>>, vector<2x32xf32>
    %1 = arith.negf %0 : vector<2x32xf32>
    %2 = math.exp %1 : vector<2x32xf32>
    %cst = arith.constant 1.000000e+00 : f32
    %3 = vector.broadcast %cst : f32 to vector<2x32xf32>
    %4 = arith.addf %3, %2 : vector<2x32xf32>
    %5 = arith.divf %3, %4 : vector<2x32xf32>
    %6 = arith.mulf %0, %5 : vector<2x32xf32>
    %c0_1 = arith.constant 0 : index
    %c0_2 = arith.constant 0 : index
    %7 = vector.load %arg1[%c0_1, %c0_2] : memref<32x96xf32, #tpu.memory_space<vmem>>, vector<32x96xf32>
    %cst_3 = arith.constant dense<0.000000e+00> : vector<2x96xf32>
    %8 = tpu.matmul %6, %7, %cst_3 {dimension_numbers = #tpu.dot_dimension_numbers<[1], [0], [0], [1], [0, 0, 1, 1], [], []>} : vector<2x32xf32>, vector<32x96xf32>, vector<2x96xf32> -> vector<2x96xf32>
    %c0_4 = arith.constant 0 : index
    %c0_5 = arith.constant 0 : index
    %9 = vector.load %arg2[%c0_4, %c0_5] : memref<1x96xf32, #tpu.memory_space<vmem>>, vector<1x96xf32>
    %10 = vector.broadcast %9 : vector<1x96xf32> to vector<2x96xf32>
    %11 = arith.addf %8, %10 : vector<2x96xf32>
    %12 = vector.extract_strided_slice %11 {offsets = [0, 0], sizes = [2, 32], strides = [1, 1]} : vector<2x96xf32> to vector<2x32xf32>
    %c0_6 = arith.constant 0 : index
    %c0_7 = arith.constant 0 : index
    %13 = vector.load %arg3[%c0_6, %c0_7] : memref<2x32xf32, #tpu.memory_space<vmem>>, vector<2x32xf32>
    tpu.vector_store %arg3[%c0_6, %c0_7], %12 {strides = array<i32>} : memref<2x32xf32, #tpu.memory_space<vmem>>, vector<2x32xf32>,
    %14 = vector.extract_strided_slice %11 {offsets = [0, 32], sizes = [2, 32], strides = [1, 1]} : vector<2x96xf32> to vector<2x32xf32>
    %c0_8 = arith.constant 0 : index
    %c0_9 = arith.constant 0 : index
    %15 = vector.load %arg4[%c0_8, %c0_9] : memref<2x32xf32, #tpu.memory_space<vmem>>, vector<2x32xf32>
    tpu.vector_store %arg4[%c0_8, %c0_9], %14 {strides = array<i32>} : memref<2x32xf32, #tpu.memory_space<vmem>>, vector<2x32xf32>,
    %16 = vector.extract_strided_slice %11 {offsets = [0, 64], sizes = [2, 32], strides = [1, 1]} : vector<2x96xf32> to vector<2x32xf32>
    %c0_10 = arith.constant 0 : index
    %c0_11 = arith.constant 0 : index
    %17 = vector.load %arg5[%c0_10, %c0_11] : memref<2x32xf32, #tpu.memory_space<vmem>>, vector<2x32xf32>
    tpu.vector_store %arg5[%c0_10, %c0_11], %16 {strides = array<i32>} : memref<2x32xf32, #tpu.memory_space<vmem>>, vector<2x32xf32>,
    return
  }
}

</mosaic_0001>

<bundles_post_ra>
// kernel: tpu_custom_call.1
= control target key start
LH: loop header
LB: loop body
LE: loop exit
PB: predicated region body
PF: predicated region fallthrough
CT: control target
= control target key end

     0   :  { %11 = vsyncpa [#allocation3], 0  ;;  %s466_s0 = inlined_call_operand.hbm [shape: f32[2,32], index: 0, kind: input, shape index: {}]   ;;  %s467_s1 = inlined_call_operand.hbm [shape: f32[32,96], index: 1, kind: input, shape index: {}]   ;;  %s468_s2 = inlined_call_operand.vmem [shape: f32[1,96], index: 2, kind: input, shape index: {}]   ;;  %s469_s3 = inlined_call_operand.hbm [shape: f32[2,32], index: 3, kind: output, shape index: {0}]   ;;  %s470_s4 = inlined_call_operand.hbm [shape: f32[2,32], index: 4, kind: output, shape index: {1}]   ;;  %s471_s5 = inlined_call_operand.hbm [shape: f32[2,32], index: 5, kind: output, shape index: {2}]  }
   0x1   :  { %12 = vsyncpa [#allocation6], 0 }
   0x2   :  { %13 = vsyncpa [#allocation4], 0 }
   0x3   :  { %14 = vsyncpa [#allocation9], 0  ;;  %s351_s18 = smov [#allocation2]   ;;  %s352_s20 = smov [#allocation5]  }
   0x4   :  { %s21_s19 = sshll.u32 %s351_s18, 4  ;;  %s30_s21 = sshll.u32 %s352_s20, 4  ;;  %s22_s19 = int_to_ptr.vmem [resolvable:$true] %s21_s19  ;;  %s393_s21 = int_to_ptr.vmem [resolvable:$true] %s30_s21 }
   0x5   :  { %s233_s24 = scalar_lea.hbm %s466_s0, 32 }
   0x6   :  { %p234_p0 = scmp.ne.s32.totalorder %s466_s0, %s233_s24  ;;  %p237_p1 = scmp.lt.u32.totalorder %s233_s24, %s466_s0 }
   0x8   :  { %p239_p2 = pnand %p237_p1, %p234_p0 }
   0xa   :  { %242 = shalt.err (!%p239_p2)
}
   0xb   :  { %s243_s29 = scalar_lea.vmem %s22_s19, 32  ;;  %p248_p4 = scmp.lt.s32.totalorder %s22_s19, %s22_s19 }
   0xc   :  { %p244_p3 = scmp.ne.s32.totalorder %s22_s19, %s243_s29  ;;  %p249_p5 = scmp.lt.s32.totalorder %s243_s29, %s243_s29 }
   0xe   :  { %p250_p6 = por %p249_p5, %p248_p4 }
  0x10   :  { %p251_p7 = pnand %p250_p6, %p244_p3 }
  0x12   :  { %254 = shalt.err (!%p251_p7)
}
  0x13   :  { %24 = dma.hbm_to_vmem [thread:$0]  %s466_s0, 32, %s22_s19, [#allocation3]  }
  0x14   :  { %s255_s9 = scalar_lea.hbm %s467_s1, 512 }
  0x15   :  { %p256_p8 = scmp.ne.s32.totalorder %s467_s1, %s255_s9  ;;  %p259_p9 = scmp.lt.u32.totalorder %s255_s9, %s467_s1 }
  0x17   :  { %p261_p10 = pnand %p259_p9, %p256_p8 }
  0x19   :  { %264 = shalt.err (!%p261_p10)
}
  0x1a   :  { %s265_s14 = scalar_lea.vmem %s393_s21, 512  ;;  %p270_p12 = scmp.lt.s32.totalorder %s393_s21, %s393_s21 }
  0x1b   :  { %p266_p11 = scmp.ne.s32.totalorder %s393_s21, %s265_s14  ;;  %p271_p13 = scmp.lt.s32.totalorder %s265_s14, %s265_s14 }
  0x1d   :  { %p272_p0 = por %p271_p13, %p270_p12 }
  0x1f   :  { %p273_p1 = pnand %p272_p0, %p266_p11 }
  0x21   :  { %276 = shalt.err (!%p273_p1)
}
  0x22   :  { %s353_s0 = smov 128   ;;  %s354_s15 = smov 8  }
  0x23   :  { %36 = dma.hbm_to_vmem [thread:$0]  %s467_s1, 512, %s393_s21, [#allocation6], %s353_s0, %s353_s0, %s354_s15  }
  0x24   :  { %343 = dma.done.wait [#allocation3], 32  }
  0x25   :  { %344 = vsyncadd [#allocation3], 4294967264 }
  0x26   :  { %345 = dma.done.wait [#allocation6], 512  }
  0x27   :  { %346 = vsyncadd [#allocation6], 4294966784  ;;  %v355_v0 = vmov 0.0|0.0   ;;  %vm356_vm0 = vmmov 0   ;;  %v357_v1 = vmov 0.0   ;;  %v53_v2 = vld [vmem:[#allocation5] sm:$0xff] }
  0x28   :  { %211 = vmatprep.subr.bf16.mxu0 %v355_v0  ;;  %208 = vmatprep.mubr.msk.f32.mxu0 %vm356_vm0, %v357_v1  ;;  %v54_v3 = vld [vmem:[#allocation5 + $0x8] sm:$0xff]  ;;  %v55_v4 = vld [vmem:[#allocation5 + $0x10] sm:$0xff]  ;;  %v56_v6 = vld [vmem:[#allocation5 + $0x18] sm:$0xff]  ;;  %vm64_vm1 = vcmask 261120   ;;  %s358_s19 = smov [#allocation7]   ;;  %vm138_vm2 = vcmask 254976  }
  0x29   :  { %v212_v5 = vpack.c.bf16 %v54_v3, %v53_v2  ;;  %v45_v7 = vld [vmem:[#allocation2] sm:$0x3]  ;;  %v215_v9 = vpack.c.bf16 %v56_v6, %v55_v4  ;;  %s155_s20 = sshll.u32 %s358_s19, 4  ;;  %s359_s21 = smov 96   ;;  %s156_s20 = int_to_ptr.vmem [resolvable:$true] %s155_s20 }
  0x2a   :  { %v192_v8 = vmul.f32 -1.442695, %v45_v7  ;;  %v193_v14 = vld [vmem:[%s468_s2] ss:$0 sm:$0xff]  ;;  %s277_s22 = scalar_lea.vmem %s156_s20, 32  ;;  %p282_p3 = scmp.lt.s32.totalorder %s156_s20, %s156_s20 }
  0x2b   :  { %213 = vmatpush3.bf16.msra.mxu0 %v212_v5  ;;  %p278_p2 = scmp.ne.s32.totalorder %s156_s20, %s277_s22  ;;  %p283_p4 = scmp.lt.s32.totalorder %s277_s22, %s277_s22 }
  0x2c   :  { %214 = vmatprep.subr.bf16.mxu0 %v355_v0  ;;  %229 = vpow2.f32 %v192_v8 }
  0x2d   :  { %p284_p5 = por %p283_p4, %p282_p3 }
  0x2f   :  { %216 = vmatpush3.bf16.msra.mxu0 %v215_v9  ;;  %p285_p6 = pnand %p284_p5, %p278_p2 }
  0x36   :  { %v230_v10 = vpop.eup %229 }
  0x37   :  { %v49_v11 = vadd.f32 1.0, %v230_v10 }
  0x39   :  { %231 = vrcp.f32 %v49_v11 }
  0x43   :  { %v232_v12 = vpop.eup %231 }
  0x44   :  { %v52_v13 = vmul.f32 %v232_v12, %v45_v7 }
  0x46   :  { %209 = vmatmul.mubr.msk.f32.vlgmr.msra.gmra.mrb[0].mxu0 %vm64_vm1, %v52_v13 }
 0x119   :  { %v134_v15 = vpop.f32.mrb[0].mxu0 }
 0x11a   :  { %v135_v16 = vadd.f32 %v193_v14, %v134_v15  ;;  %v210_v17 = vpop.f32.mrb[1].mxu0 }
 0x11c   :  { %141 = vrot.lane.b32.xlu0 %v135_v16, %s359_s21  ;;  %139 = vst.msk [vmem:[#allocation7] sm:$0x3] %vm138_vm2, %v135_v16 }
 0x11d   :  { %288 = shalt.err (!%p285_p6)
}
 0x11e   :  { %s289_s24 = scalar_lea.hbm %s469_s3, 32 }
 0x11f   :  { %p290_p7 = scmp.ne.s32.totalorder %s469_s3, %s289_s24  ;;  %p293_p8 = scmp.lt.u32.totalorder %s289_s24, %s469_s3 }
 0x121   :  { %p295_p9 = pnand %p293_p8, %p290_p7 }
 0x123   :  { %298 = shalt.err (!%p295_p9)
}
 0x124   :  { %158 = dma.vmem_to_hbm [thread:$0]  %s156_s20, 32, %s469_s3, [#allocation4]  }
 0x125   :  { %s360_s6 = smov 64   ;;  %s361_s7 = smov [#allocation8]  }
 0x126   :  { %145 = vrot.lane.b32.xlu0 %v135_v16, %s360_s6  ;;  %s165_s8 = sshll.u32 %s361_s7, 4  ;;  %s362_s9 = smov [#allocation10]   ;;  %s166_s8 = int_to_ptr.vmem [resolvable:$true] %s165_s8 }
 0x127   :  { %s175_s10 = sshll.u32 %s362_s9, 4  ;;  %s299_s11 = scalar_lea.vmem %s166_s8, 32  ;;  %s176_s10 = int_to_ptr.vmem [resolvable:$true] %s175_s10 }
 0x128   :  { %p300_p10 = scmp.ne.s32.totalorder %s166_s8, %s299_s11  ;;  %p304_p11 = scmp.lt.s32.totalorder %s166_s8, %s166_s8 }
 0x129   :  { %p305_p12 = scmp.lt.s32.totalorder %s299_s11, %s299_s11 }
 0x12b   :  { %p306_p13 = por %p305_p12, %p304_p11 }
 0x12d   :  { %p307_p0 = pnand %p306_p13, %p300_p10 }
 0x18e   :  { %v142_v18 = vpop.permute.xlu0 %141 }
 0x18f   :  { %144 = vst.msk [vmem:[#allocation8] sm:$0x3] %vm138_vm2, %v142_v18 }
 0x190   :  { %310 = shalt.err (!%p307_p0)
}
 0x191   :  { %s311_s3 = scalar_lea.hbm %s470_s4, 32 }
 0x192   :  { %p312_p1 = scmp.ne.s32.totalorder %s470_s4, %s311_s3  ;;  %p315_p2 = scmp.lt.u32.totalorder %s311_s3, %s470_s4 }
 0x194   :  { %p317_p3 = pnand %p315_p2, %p312_p1 }
 0x196   :  { %320 = shalt.err (!%p317_p3)
}
 0x197   :  { %168 = dma.vmem_to_hbm [thread:$0]  %s166_s8, 32, %s470_s4, [#allocation9]  }
 0x198   :  { %v146_v19 = vpop.permute.xlu0 %145  ;;  %s321_s18 = scalar_lea.vmem %s176_s10, 32  ;;  %p326_p5 = scmp.lt.s32.totalorder %s176_s10, %s176_s10 }
 0x199   :  { %148 = vst.msk [vmem:[#allocation10] sm:$0x3] %vm138_vm2, %v146_v19  ;;  %p322_p4 = scmp.ne.s32.totalorder %s176_s10, %s321_s18  ;;  %p327_p6 = scmp.lt.s32.totalorder %s321_s18, %s321_s18 }
 0x19b   :  { %p328_p7 = por %p327_p6, %p326_p5 }
 0x19d   :  { %p329_p8 = pnand %p328_p7, %p322_p4 }
 0x19f   :  { %332 = shalt.err (!%p329_p8)
}
 0x1a0   :  { %s333_s21 = scalar_lea.hbm %s471_s5, 32 }
 0x1a1   :  { %p334_p9 = scmp.ne.s32.totalorder %s471_s5, %s333_s21  ;;  %p337_p10 = scmp.lt.u32.totalorder %s333_s21, %s471_s5 }
 0x1a3   :  { %p339_p11 = pnand %p337_p10, %p334_p9 }
 0x1a5   :  { %342 = shalt.err (!%p339_p11)
}
 0x1a6   :  { %178 = dma.vmem_to_hbm [thread:$0]  %s176_s10, 32, %s471_s5, [#allocation9]  }
 0x1a7   :  { %347 = dma.done.wait [#allocation4], 32  }
 0x1a8   :  { %348 = vsyncadd [#allocation4], 4294967264 }
 0x1a9   :  { %349 = dma.done.wait [#allocation9], 64  }
 0x1aa   :  { %350 = vsyncadd [#allocation9], 4294967232 }
 0x1ab   :  { %188 = vsyncpa [#allocation3], 1 }
 0x1ac   :  { %189 = vsyncpa [#allocation6], 1 }
 0x1ad   :  { %190 = vsyncpa [#allocation4], 1 }
 0x1ae   :  { %191 = vsyncpa [#allocation9], 1 }

</bundles_post_ra>
